<compile_context>
chip_gen: v6e
topology: v6e:2x2x1
jax: 0.10.0
libtpu: 0.0.40
codegen_flags: <defaults>
</compile_context>

<pallas_src>
import functools

import jax
import jax.numpy as jnp
from jax.experimental import pallas as pl
from jax.experimental.pallas import tpu as pltpu


def _nt_xent_kernel(q_ref, k_ref, lse_ref, *scratch, fixed_max):
    qi = pl.program_id(0)
    ki = pl.program_id(1)
    nk = pl.num_programs(1)

    use_fixed_max = fixed_max is not None
    if use_fixed_max:
        (l_acc,) = scratch
        m_acc = None
    else:
        m_acc, l_acc = scratch

    @pl.when(ki == 0)
    def _init():
        l_acc[...] = jnp.zeros_like(l_acc)
        if not use_fixed_max:
            m_acc[...] = jnp.full_like(m_acc, -jnp.inf)

    # One MXU op per grid step: contract the last dims of the (T, D) query and
    # key blocks (operands already pre-normalized, pre-scaled and in the MXU
    # dtype; accumulate in f32). No in-kernel transpose.
    s = jax.lax.dot_general(
        q_ref[...], k_ref[...],
        (((1,), (1,)), ((), ())),
        preferred_element_type=jnp.float32)                     # (T, T)

    # Self-similarity (global diagonal) lives only where row tile == key tile.
    r = jax.lax.broadcasted_iota(jnp.int32, s.shape, 0)
    c = jax.lax.broadcasted_iota(jnp.int32, s.shape, 1)
    s = jnp.where(jnp.logical_and(r == c, qi == ki), -jnp.inf, s)

    if use_fixed_max:
        # Logits are exactly bounded by 1/temperature (unit vectors), so skip
        # the running max and correction entirely.
        l_acc[...] += jnp.sum(jnp.exp(s - fixed_max), axis=-1, keepdims=True)
    else:
        m_prev = m_acc[...]
        m_new = jnp.maximum(m_prev, jnp.max(s, axis=-1, keepdims=True))
        l_acc[...] = (jnp.exp(m_prev - m_new) * l_acc[...]
                      + jnp.sum(jnp.exp(s - m_new), axis=-1, keepdims=True))
        m_acc[...] = m_new

    @pl.when(ki == nk - 1)
    def _finalize():
        if use_fixed_max:
            lse_ref[...] = fixed_max + jnp.log(l_acc[...])
        else:
            lse_ref[...] = m_acc[...] + jnp.log(l_acc[...])


def _pick_tile(n, d, itemsize):
    """Largest row tile (multiple of 8, cap 512) dividing N that fits VMEM
    comfortably and, when possible, leaves >= 2 row blocks (v7x megacore)."""
    budget = 24 * 1024 * 1024   # headroom under the 32 MiB scoped default
    fallback = None
    for t in (512, 256, 128, 64, 32, 16, 8):
        if n % t:
            continue
        if fallback is None:
            fallback = t
        # double-buffered q/k input blocks + sim/exp intermediates
        vmem = 4 * t * d * itemsize + 4 * t * t * 4
        if vmem <= budget and (n // t >= 2 or t == n):
            return t
    return fallback if fallback is not None else n


def contrastive_loss(z_i, z_j, temperature, *, block_rows=None, mxu_dtype=None):
    """NT-Xent loss. z_i, z_j: (B, D). world_size = 1."""
    assert z_i.shape == z_j.shape and z_i.ndim == 2
    b, d = z_i.shape
    n = 2 * b
    temperature = float(temperature)

    if mxu_dtype is None:
        # bf16 inputs keep bf16 MXU operands; f32 inputs default to f32 for
        # PyTorch-level accuracy (pass jnp.bfloat16 explicitly for speed).
        mxu_dtype = jnp.bfloat16 if z_i.dtype == jnp.bfloat16 else jnp.float32
    itemsize = jnp.dtype(mxu_dtype).itemsize

    # ---- O(N*D) preprocessing, hoisted out of the N^2 kernel --------------
    # L2-normalize rows and fold 1/sqrt(temperature) into BOTH operands so the
    # MXU output inside the kernel is already sim/temperature.
    inv_sqrt_t = 1.0 / (temperature ** 0.5)

    def _scale(x):
        xf = x.astype(jnp.float32)
        sq = jnp.sum(xf * xf, axis=-1, keepdims=True)
        return xf * (jax.lax.rsqrt(jnp.maximum(sq, jnp.float32(1e-8)))
                     * jnp.float32(inv_sqrt_t))

    zi_s = _scale(z_i)
    zj_s = _scale(z_j)

    # Positive logit per pair in full f32: pos[k] = <zn_i[k], zn_j[k]> / temp.
    pos = jnp.sum(zi_s * zj_s, axis=-1)                       # (B,)

    # Pair-interleave rows (row 2k = z_i[k], row 2k+1 = z_j[k]): one matmul
    # per grid step covers the whole 2x2 block structure and the only masking
    # needed is the global diagonal.
    z_int = jnp.stack([zi_s, zj_s], axis=1).reshape(n, d).astype(mxu_dtype)

    t = block_rows if block_rows is not None else _pick_tile(n, d, itemsize)
    assert n % t == 0, (n, t)
    num_blocks = n // t

    # Exact logit upper bound 1/temperature; fall back to a running max for
    # very small temperatures (exp underflow risk in the fixed-bound path).
    fixed_max = (1.0 / temperature) if temperature >= 0.05 else None

    scratch_shapes = [pltpu.VMEM((t, 1), jnp.float32)]              # l (sum exp)
    if fixed_max is None:
        scratch_shapes = [pltpu.VMEM((t, 1), jnp.float32)] + scratch_shapes  # m

    kernel = functools.partial(_nt_xent_kernel, fixed_max=fixed_max)

    cost = pl.CostEstimate(
        flops=2 * n * n * d,
        transcendentals=n * n,
        bytes_accessed=(num_blocks + 1) * n * d * itemsize + n * 4,
    )

    lse = pl.pallas_call(
        kernel,
        out_shape=jax.ShapeDtypeStruct((n, 1), jnp.float32),
        grid_spec=pltpu.PrefetchScalarGridSpec(
            num_scalar_prefetch=0,
            grid=(num_blocks, num_blocks),
            in_specs=[
                pl.BlockSpec((t, d), lambda qi, ki: (qi, 0)),   # query rows
                pl.BlockSpec((t, d), lambda qi, ki: (ki, 0)),   # key rows
            ],
            out_specs=pl.BlockSpec((t, 1), lambda qi, ki: (qi, 0)),
            scratch_shapes=scratch_shapes,
        ),
        compiler_params=pltpu.CompilerParams(
            dimension_semantics=("parallel", "arbitrary"),
        ),
        cost_estimate=cost,
    )(z_int, z_int)

    # sum_r (lse_r - pos_r); each pair contributes its positive twice.
    return (jnp.sum(lse) - 2.0 * jnp.sum(pos)) / jnp.float32(n)


def _reference_loss(z_i, z_j, temperature):
    # Pure-JAX reference mirroring the PyTorch forward (world_size = 1).
    b, _ = z_i.shape
    n = 2 * b
    z = jnp.concatenate([z_i, z_j], axis=0).astype(jnp.float32)
    norm = jnp.sqrt(jnp.sum(z * z, axis=-1, keepdims=True))
    sim = (z @ z.T) / jnp.maximum(norm * norm.T, 1e-8) / temperature
    idx = jnp.arange(n)
    pos = sim[idx, (idx + b) % n]
    sim_masked = jnp.where(jnp.eye(n, dtype=bool), -jnp.inf, sim)
    lse = jax.scipy.special.logsumexp(sim_masked, axis=-1)
    return jnp.sum(lse - pos) / n


if __name__ == "__main__":
    temperature = 0.5
    key = jax.random.PRNGKey(0)
    k1, k2, k3, k4 = jax.random.split(key, 4)

    # Small shape consistent with the module: batch=4, hidden=32 (grid 1x1).
    z_i = jax.random.normal(k1, (4, 32), dtype=jnp.float32)
    z_j = jax.random.normal(k2, (4, 32), dtype=jnp.float32)
    loss = jax.block_until_ready(contrastive_loss(z_i, z_j, temperature))
    ref = _reference_loss(z_i, z_j, temperature)
    assert jnp.isfinite(loss), "loss is not finite"
    assert jnp.allclose(loss, ref, rtol=1e-4, atol=1e-4), (loss, ref)

    # Larger shape with a forced small row tile to exercise the multi-tile
    # path (interleaved N=32, tile 8 -> 4x4 grid, per-tile diagonal masking).
    z_i2 = jax.random.normal(k3, (16, 32), dtype=jnp.float32)
    z_j2 = jax.random.normal(k4, (16, 32), dtype=jnp.float32)
    loss2 = jax.block_until_ready(
        contrastive_loss(z_i2, z_j2, temperature, block_rows=8))
    ref2 = _reference_loss(z_i2, z_j2, temperature)
    assert jnp.isfinite(loss2), "loss2 is not finite"
    assert jnp.allclose(loss2, ref2, rtol=1e-4, atol=1e-4), (loss2, ref2)

    # Running-max fallback path (very small temperature disables fixed bound).
    loss3 = jax.block_until_ready(
        contrastive_loss(z_i2, z_j2, 0.02, block_rows=8))
    ref3 = _reference_loss(z_i2, z_j2, 0.02)
    assert jnp.isfinite(loss3), "loss3 is not finite"
    assert jnp.allclose(loss3, ref3, rtol=1e-4, atol=1e-4), (loss3, ref3)

    # bf16 MXU-operand path (accuracy/speed trade-off flag), looser tolerance.
    loss4 = jax.block_until_ready(
        contrastive_loss(z_i2, z_j2, temperature, block_rows=8,
                         mxu_dtype=jnp.bfloat16))
    assert jnp.isfinite(loss4), "loss4 is not finite"
    assert jnp.allclose(loss4, ref2, rtol=3e-2, atol=3e-2), (loss4, ref2)

    print("KERNEL_OK")
</pallas_src>

<mosaic_0001>
module attributes {stable_mosaic.version = 11 : i64} {
  func.func @_nt_xent_kernel(%arg0: i32, %arg1: i32, %arg2: memref<8x32xf32, #tpu.memory_space<vmem>>, %arg3: memref<8x32xf32, #tpu.memory_space<vmem>>, %arg4: memref<8x1xf32, #tpu.memory_space<vmem>>, %arg5: memref<8x1xf32, #tpu.memory_space<vmem>>) attributes {dimension_semantics = [#tpu.dimension_semantics<parallel>, #tpu.dimension_semantics<arbitrary>], iteration_bounds = array<i64: 1, 1>, scalar_prefetch = 0 : i64, scratch_operands = 1 : i64, tpu.core_type = #tpu.core_type<tc>, window_params = [{transform_indices = @transform_0, window_bounds = array<i64: 8, 32>}, {transform_indices = @transform_1, window_bounds = array<i64: 8, 32>}, {transform_indices = @transform_2, window_bounds = array<i64: 8, 1>}]} {
    %c0_i32 = arith.constant 0 : i32
    %0 = arith.cmpi eq, %arg1, %c0_i32 : i32
    %1 = arith.extui %0 : i1 to i32
    %c0_i32_0 = arith.constant 0 : i32
    %2 = arith.cmpi ne, %1, %c0_i32_0 : i32
    scf.if %2 {
      %cst_13 = arith.constant 0.000000e+00 : f32
      %25 = vector.broadcast %cst_13 : f32 to vector<8x1xf32>
      %c0_14 = arith.constant 0 : index
      %c0_15 = arith.constant 0 : index
      %26 = vector.load %arg5[%c0_14, %c0_15] : memref<8x1xf32, #tpu.memory_space<vmem>>, vector<8x1xf32>
      tpu.vector_store %arg5[%c0_14, %c0_15], %25 {strides = array<i32>} : memref<8x1xf32, #tpu.memory_space<vmem>>, vector<8x1xf32>,
    } else {
    }
    %c0 = arith.constant 0 : index
    %c0_1 = arith.constant 0 : index
    %3 = vector.load %arg2[%c0, %c0_1] : memref<8x32xf32, #tpu.memory_space<vmem>>, vector<8x32xf32>
    %c0_2 = arith.constant 0 : index
    %c0_3 = arith.constant 0 : index
    %4 = vector.load %arg3[%c0_2, %c0_3] : memref<8x32xf32, #tpu.memory_space<vmem>>, vector<8x32xf32>
    %cst = arith.constant dense<0.000000e+00> : vector<8x8xf32>
    %5 = tpu.matmul %3, %4, %cst {dimension_numbers = #tpu.dot_dimension_numbers<[1], [1], [0], [0], [0, 0, 1, 0], [], []>} : vector<8x32xf32>, vector<8x32xf32>, vector<8x8xf32> -> vector<8x8xf32>
    %6 = tpu.iota {dimensions = array<i32: 0>} : vector<8x8xi32>
    %7 = tpu.iota {dimensions = array<i32: 1>} : vector<8x8xi32>
    %8 = arith.cmpi eq, %6, %7 : vector<8x8xi32>
    %9 = arith.cmpi eq, %arg0, %arg1 : i32
    %10 = vector.broadcast %9 : i1 to vector<8x8xi1>
    %11 = arith.andi %8, %10 : vector<8x8xi1>
    %cst_4 = arith.constant 0xFF800000 : f32
    %12 = vector.broadcast %cst_4 : f32 to vector<8x8xf32>
    %13 = arith.select %11, %12, %5 : vector<8x8xi1>, vector<8x8xf32>
    %c0_5 = arith.constant 0 : index
    %c0_6 = arith.constant 0 : index
    %14 = vector.load %arg5[%c0_5, %c0_6] : memref<8x1xf32, #tpu.memory_space<vmem>>, vector<8x1xf32>
    %cst_7 = arith.constant 2.000000e+00 : f32
    %15 = vector.broadcast %cst_7 : f32 to vector<8x8xf32>
    %16 = arith.subf %13, %15 : vector<8x8xf32>
    %17 = math.exp %16 : vector<8x8xf32>
    %cst_8 = arith.constant dense<0.000000e+00> : vector<8xf32>
    %18 = vector.multi_reduction <add>, %17, %cst_8 [1] : vector<8x8xf32> to vector<8xf32>
    %19 = vector.shape_cast %18 : vector<8xf32> to vector<8x1xf32>
    %20 = arith.addf %14, %19 : vector<8x1xf32>
    %c0_9 = arith.constant 0 : index
    %c0_10 = arith.constant 0 : index
    %21 = vector.load %arg5[%c0_9, %c0_10] : memref<8x1xf32, #tpu.memory_space<vmem>>, vector<8x1xf32>
    tpu.vector_store %arg5[%c0_9, %c0_10], %20 {strides = array<i32>} : memref<8x1xf32, #tpu.memory_space<vmem>>, vector<8x1xf32>,
    %c0_i32_11 = arith.constant 0 : i32
    %22 = arith.cmpi eq, %arg1, %c0_i32_11 : i32
    %23 = arith.extui %22 : i1 to i32
    %c0_i32_12 = arith.constant 0 : i32
    %24 = arith.cmpi ne, %23, %c0_i32_12 : i32
    scf.if %24 {
      %c0_13 = arith.constant 0 : index
      %c0_14 = arith.constant 0 : index
      %25 = vector.load %arg5[%c0_13, %c0_14] : memref<8x1xf32, #tpu.memory_space<vmem>>, vector<8x1xf32>
      %26 = math.log %25 : vector<8x1xf32>
      %cst_15 = arith.constant 2.000000e+00 : f32
      %27 = vector.broadcast %cst_15 : f32 to vector<8x1xf32>
      %28 = arith.addf %27, %26 : vector<8x1xf32>
      %c0_16 = arith.constant 0 : index
      %c0_17 = arith.constant 0 : index
      %29 = vector.load %arg4[%c0_16, %c0_17] : memref<8x1xf32, #tpu.memory_space<vmem>>, vector<8x1xf32>
      tpu.vector_store %arg4[%c0_16, %c0_17], %28 {strides = array<i32>} : memref<8x1xf32, #tpu.memory_space<vmem>>, vector<8x1xf32>,
    } else {
    }
    return
  }
  func.func @transform_0(%arg0: i32, %arg1: i32) -> (i32, i32) {
    %c0_i32 = arith.constant 0 : i32
    %c0_i32_0 = arith.constant 0 : i32
    return %arg0, %c0_i32 : i32, i32
  }
  func.func @transform_1(%arg0: i32, %arg1: i32) -> (i32, i32) {
    %c0_i32 = arith.constant 0 : i32
    %c0_i32_0 = arith.constant 0 : i32
    return %arg1, %c0_i32 : i32, i32
  }
  func.func @transform_2(%arg0: i32, %arg1: i32) -> (i32, i32) {
    %c0_i32 = arith.constant 0 : i32
    %c0_i32_0 = arith.constant 0 : i32
    return %arg0, %c0_i32 : i32, i32
  }
}

</mosaic_0001>

<bundles_post_ra>
// kernel: tpu_custom_call.1
= control target key start
LH: loop header
LB: loop body
LE: loop exit
PB: predicated region body
PF: predicated region fallthrough
CT: control target
= control target key end

     0   :  { %7 = vsyncpa [#allocation4], 0  ;;  %s249_s0 = inlined_call_operand.hbm [shape: f32[8,32], index: 0, kind: input, shape index: {}]   ;;  %s250_s1 = inlined_call_operand.hbm [shape: f32[8,32], index: 1, kind: input, shape index: {}]   ;;  %s251_s2 = inlined_call_operand.vmem [shape: f32[8,1], index: 2, kind: output, shape index: {}]  }
   0x1   :  { %8 = vsyncpa [#allocation6], 0  ;;  %s218_s9 = smov [#allocation3]   ;;  %s219_s11 = smov [#allocation5]  }
   0x2   :  { %s15_s10 = sshll.u32 %s218_s9, 4  ;;  %s25_s12 = sshll.u32 %s219_s11, 4  ;;  %s16_s10 = int_to_ptr.vmem [resolvable:$true] %s15_s10  ;;  %s26_s12 = int_to_ptr.vmem [resolvable:$true] %s25_s12 }
   0x3   :  { %s182_s13 = scalar_lea.vmem %s16_s10, 128  ;;  %p187_p1 = scmp.lt.s32.totalorder %s16_s10, %s16_s10 }
   0x4   :  { %p183_p0 = scmp.ne.s32.totalorder %s16_s10, %s182_s13  ;;  %p188_p2 = scmp.lt.s32.totalorder %s182_s13, %s182_s13 }
   0x6   :  { %p189_p3 = por %p188_p2, %p187_p1 }
   0x8   :  { %p190_p4 = pnand %p189_p3, %p183_p0 }
   0xa   :  { %193 = shalt.err (!%p190_p4)
}
   0xb   :  { %18 = dma.hbm_to_vmem [thread:$0]  %s249_s0, 128, %s16_s10, [#allocation4]  }
   0xc   :  { %s202_s16 = scalar_lea.vmem %s26_s12, 128  ;;  %p207_p6 = scmp.lt.s32.totalorder %s26_s12, %s26_s12 }
   0xd   :  { %p203_p5 = scmp.ne.s32.totalorder %s26_s12, %s202_s16  ;;  %p208_p7 = scmp.lt.s32.totalorder %s202_s16, %s202_s16 }
   0xf   :  { %p209_p8 = por %p208_p7, %p207_p6 }
  0x11   :  { %p210_p9 = pnand %p209_p8, %p203_p5 }
  0x13   :  { %213 = shalt.err (!%p210_p9)
}
  0x14   :  { %28 = dma.hbm_to_vmem [thread:$0]  %s250_s1, 128, %s26_s12, [#allocation6]  }
  0x15   :  { %214 = dma.done.wait [#allocation4], 128  }
  0x16   :  { %215 = vsyncadd [#allocation4], 4294967168 }
  0x17   :  { %216 = dma.done.wait [#allocation6], 128  }
  0x18   :  { %217 = vsyncadd [#allocation6], 4294967168  ;;  %vm39_vm0 = vcmask 7168   ;;  %v220_v0 = vmov 0.0   ;;  %vm221_vm1 = vmmov 0   ;;  %vm43_vm2 = vcmask 261120  }
  0x19   :  { %40 = vst.msk [vmem:[#allocation2] sm:$0xff] %vm39_vm0, %v220_v0  ;;  %161 = vmatprep.subr.mxu0 %v220_v0  ;;  %163 = vmatprep.mubr.msk.f32.mxu0 %vm221_vm1, %v220_v0  ;;  %v42_v1 = vld [vmem:[#allocation5] sm:$0xff]  ;;  %v41_v2 = vld [vmem:[#allocation3] sm:$0xff]  ;;  %v120_v3 = vlaneseq  ;;  %vm135_vm4 = vcmask 64512  }
  0x1a   :  { %162 = vmatpush3.xpose.msk.msra.mxu0 %vm43_vm2, %v42_v1 }
  0x1b   :  { %v121_v4 = vshrl.u32 %v120_v3, 7  ;;  %v123_v5 = vand.u32 127, %v120_v3 }
  0x1d   :  { %164 = vmatmul.mubr.msk.f32.vlgmr.msra.gmra.mxu0 %vm43_vm2, %v41_v2  ;;  %vm124_vm3 = vcmp.eq.s32.totalorder %v121_v4, %v123_v5 }
  0x20   :  { %v131_v13 = vld [vmem:[#allocation2] sm:$0xff] }
  0xdd   :  { %v116_v6 = vpop.f32.mrf.mxu0 }
  0xde   :  { %v130_v7 = vsel %vm124_vm3, -inf, %v116_v6 }
  0xdf   :  { %v158_v8 = vadd.f32 -2.0, %v130_v7  ;;  %v165_v9 = vpop.f32.mrf.mxu0 }
  0xe1   :  { %v133_v10 = vmul.f32 1.442695, %v158_v8 }
  0xe3   :  { %170 = vpow2.f32 %v133_v10 }
  0xf0   :  { %v171_v11 = vpop.eup %170 }
  0xf1   :  { %v136_v12 = vsel %vm135_vm4, %v171_v11, 0.0 }
  0xf2   :  { %137 = vadd.xlane.f32.xlu0 %v136_v12 }
 0x17b   :  { %v138_v14 = vpop.xlane.xlu0 %137 }
 0x17c   :  { %v139_v15 = vadd.f32 %v138_v14, %v131_v13 }
 0x17e   :  { %141 = vst.msk [vmem:[#allocation2] sm:$0xff] %vm39_vm0, %v139_v15 }
 0x185   :  { %v145_v16 = vld [vmem:[#allocation2] sm:$0xff] }
 0x186   :  { %172 = vlog2.f32 %v145_v16 }
 0x193   :  { %v173_v17 = vpop.eup %172 }
 0x194   :  { %v147_v18 = vmul.f32 0.6931472, %v173_v17 }
 0x196   :  { %v148_v19 = vadd.f32 2.0, %v147_v18 }
 0x198   :  { %149 = vst.msk [vmem:[%s251_s2] sm:$0xff] %vm39_vm0, %v148_v19 }
 0x199   :  { %154 = vsyncpa [#allocation4], 1 }
 0x19a   :  { %155 = vsyncpa [#allocation6], 1 }

</bundles_post_ra>
